<compile_context>
chip_gen: v7x
topology: tpu7x:2x2x1
jax: 0.10.0
libtpu: 0.0.40
codegen_flags: <defaults>
</compile_context>

<pallas_src>
import jax
import jax.numpy as jnp
import numpy as np
from jax.experimental import pallas as pl
from jax.experimental.pallas import tpu as pltpu

EPS = 1e-5                       # nn.BatchNorm1d default eps
LANE = 128                       # TPU lane width
SUBLANE_BF16 = 16                # bf16 sublane packing quantum
VMEM_BUDGET = 40 * 1024 * 1024   # conservative; fits v7x's 64 MiB physical VMEM


def _round_up(x, m):
    return ((x + m - 1) // m) * m


def _make_kernel(num_main, c1p):
    """Fused kernel: (layer0 | downsample) fused matmul, remaining main layers,
    residual add + final ReLU.  `c1p` = padded width of the first main layer."""

    def kernel(*refs):
        x_ref = refs[0]
        out_ref = refs[-1]
        params = refs[1:-1]                  # (W_fused, b_fused, W1, b1, ...)

        x = x_ref[...]                       # already bf16 (cast host-side)

        # fused (first main layer | downsample) matmul, f32 accumulation
        z = jnp.dot(x, params[0][...], preferred_element_type=jnp.float32)
        z = z + params[1][...]
        h = z[:, :c1p]                       # first main layer (lane-aligned split)
        d = z[:, c1p:]                       # downsample branch

        if num_main > 1:
            h = jnp.maximum(h, 0.0)

        # remaining main layers (BN already folded into W/b)
        for li in range(1, num_main):
            w_ref = params[2 * li]
            b_ref = params[2 * li + 1]
            h = jnp.dot(h.astype(jnp.bfloat16), w_ref[...],
                        preferred_element_type=jnp.float32) + b_ref[...]
            if li < num_main - 1:
                h = jnp.maximum(h, 0.0)

        # residual add + final ReLU in f32
        out_ref[...] = jnp.maximum(h + d, 0.0).astype(out_ref.dtype)

    return kernel


def prepare_params(params):
    """Fold eval-mode BN into W/b, pad channels (layer-0/downsample Cin only to
    the bf16 sublane quantum, everything else to LANE), fuse the first main
    layer with the downsample branch, cast weights to bf16."""

    def fold(p):
        scale = p["gamma"] * jax.lax.rsqrt(p["var"] + EPS)        # (1, Cout)
        w = p["W"] * scale                                        # (Cin, Cout)
        b = (p["b"] - p["mean"]) * scale + p["beta"]              # (1, Cout)
        return w, b

    def pad(w, b, cin_mult):
        cin, cout = w.shape
        cin_p, cout_p = _round_up(cin, cin_mult), _round_up(cout, LANE)
        w = jnp.pad(w, ((0, cin_p - cin), (0, cout_p - cout)))
        b = jnp.pad(b, ((0, 0), (0, cout_p - cout)))
        return w, b

    num_main = len(params) - 1
    folded = []
    for li, p in enumerate(params):
        # Layer 0 and the downsample consume x directly: their Cin only needs
        # the 16-row sublane quantum (x's feature dim is a full-array block).
        # Later layers consume a 128-padded activation, so Cin pads to 128.
        cin_mult = SUBLANE_BF16 if (li == 0 or li == num_main) else LANE
        folded.append(pad(*fold(p), cin_mult))

    w0, b0 = folded[0]          # first main layer
    wd, bd = folded[-1]         # downsample
    w_fused = jnp.concatenate([w0, wd], axis=1).astype(jnp.bfloat16)
    b_fused = jnp.concatenate([b0, bd], axis=1)

    flat = [w_fused, b_fused]
    for li in range(1, num_main):
        w, b = folded[li]
        flat.extend([w.astype(jnp.bfloat16), b])

    c0p, c1p = w0.shape
    clp = wd.shape[1]
    return flat, num_main, c0p, c1p, clp


def _num_tensorcores():
    """v7x has 2 TensorCores per chip; v5e/v6e have 1."""
    try:
        kind = jax.devices()[0].device_kind.lower()
    except Exception:
        return 1
    return 2 if ("v7" in kind or "7x" in kind) else 1


def _choose_tiling(n, c0p, clp, weight_bytes, tm_max=1024,
                   num_cores=1, min_rows_per_core=512):
    """Minimal-padding row tiling.

    Per-step VMEM (bytes) ~= 2*(tm*c0p*2 [bf16 x] + tm*clp*4 [f32 out])
                             + 2*weight_bytes (pipeline buffers).
    tm is shrunk (by adding grid steps) until that fits VMEM_BUDGET, which
    keeps wide-channel reuse inside v7x's 64 MiB VMEM.
    """
    n_q = _round_up(max(n, 1), SUBLANE_BF16)
    num_steps = -(-n_q // tm_max)
    # Only split rows across TensorCores (v7x) when each core gets enough work
    # to pay for the extra grid step; v5e/v6e always take one big tile.
    if num_cores > 1 and n_q >= num_cores * min_rows_per_core:
        num_steps = max(num_steps, num_cores)

    def tile(steps):
        return _round_up(-(-n_q // steps), SUBLANE_BF16)

    tm = tile(num_steps)
    while (2 * (tm * c0p * 2 + tm * clp * 4) + 2 * weight_bytes > VMEM_BUDGET
           and tm > SUBLANE_BF16):
        num_steps += 1
        tm = tile(num_steps)
    return tm, num_steps


def mlp_resblock(x, params, tm_max=1024):
    """x: (N, C0) float32.  params: list of per-Linear dicts (main layers then
    downsample) with keys W (Cin,Cout), b, gamma, beta, mean, var (1,Cout)."""
    n, c0 = x.shape
    c_last = params[-1]["W"].shape[1]

    flat, num_main, c0p, c1p, clp = prepare_params(params)
    weight_bytes = sum(int(a.size) * a.dtype.itemsize for a in flat)

    tm, num_steps = _choose_tiling(n, c0p, clp, weight_bytes, tm_max=tm_max,
                                   num_cores=_num_tensorcores())
    n_pad = tm * num_steps

    # Host-side pad + bf16 cast: halves the streamed x bytes; feature dim is
    # padded only to c0p (full-array block), not to 128.
    x_p = jnp.pad(x, ((0, n_pad - n), (0, c0p - c0))).astype(jnp.bfloat16)

    in_specs = [pl.BlockSpec((tm, c0p), lambda i: (i, 0))]
    for a in flat:
        # Grid-invariant weights/biases: full-array blocks, block index (0,0).
        in_specs.append(pl.BlockSpec(a.shape, lambda i: (0, 0)))

    vmem_est = 2 * (tm * c0p * 2 + tm * clp * 4) + 2 * weight_bytes
    cp_kwargs = dict(dimension_semantics=("parallel",))
    if vmem_est > 24 * 1024 * 1024:
        # only needed for wide-channel reuse; stay under v7x's 64 MiB VMEM
        cp_kwargs["vmem_limit_bytes"] = int(min(vmem_est + (8 << 20), 60 << 20))

    out = pl.pallas_call(
        _make_kernel(num_main, c1p),
        grid=(num_steps,),
        in_specs=in_specs,
        out_specs=pl.BlockSpec((tm, clp), lambda i: (i, 0)),
        out_shape=jax.ShapeDtypeStruct((n_pad, clp), jnp.float32),
        compiler_params=pltpu.CompilerParams(**cp_kwargs),
    )(x_p, *flat)

    return out[:n, :c_last]


def init_params(key, channels):
    """Deterministic synthetic init mirroring the PyTorch module's shapes."""
    num_main = len(channels) - 1
    dims = [(channels[i], channels[i + 1]) for i in range(num_main)]
    dims.append((channels[0], channels[-1]))  # downsample
    params = []
    for cin, cout in dims:
        key, k1, k2, k3, k4, k5 = jax.random.split(key, 6)
        bound = 1.0 / float(np.sqrt(cin))
        params.append(
            dict(
                W=jax.random.uniform(k1, (cin, cout), jnp.float32, -bound, bound),
                b=jax.random.uniform(k2, (1, cout), jnp.float32, -bound, bound),
                gamma=1.0 + 0.1 * jax.random.normal(k3, (1, cout), jnp.float32),
                beta=0.1 * jax.random.normal(k4, (1, cout), jnp.float32),
                mean=0.1 * jax.random.normal(k5, (1, cout), jnp.float32),
                var=jnp.ones((1, cout), jnp.float32),
            )
        )
    return params


def ref_forward(x, params):
    """Pure-JAX f32 reference matching the PyTorch forward (eval-mode BN)."""

    def lin_bn(h, p):
        y = h @ p["W"] + p["b"]
        return (y - p["mean"]) * jax.lax.rsqrt(p["var"] + EPS) * p["gamma"] + p["beta"]

    num_main = len(params) - 1
    h = x
    for li in range(num_main):
        h = lin_bn(h, params[li])
        if li < num_main - 1:
            h = jnp.maximum(h, 0.0)
    d = lin_bn(x, params[-1])
    return jnp.maximum(h + d, 0.0)


if __name__ == "__main__":
    channels = [32, 64, 64, 32]  # MLP_ResBlock(channels=[32, 64, 64, 32])
    N = 256

    key = jax.random.PRNGKey(0)
    kx, kp = jax.random.split(key)
    x = jax.random.normal(kx, (N, channels[0]), jnp.float32)
    params = init_params(kp, channels)

    out = mlp_resblock(x, params)
    out = jax.block_until_ready(out)

    ref = ref_forward(x, params)
    err = float(jnp.max(jnp.abs(out - ref)))
    # bf16 matmul operands (f32 accumulation) -> looser tolerance than pure f32
    assert jnp.allclose(out, ref, atol=5e-2, rtol=5e-2), f"max abs err = {err}"

    print("KERNEL_OK")
</pallas_src>

<mosaic_0001>
module attributes {stable_mosaic.version = 11 : i64} {
  func.func @kernel(%arg0: i32, %arg1: memref<256x32xbf16, #tpu.memory_space<vmem>>, %arg2: memref<32x256xbf16, #tpu.memory_space<vmem>>, %arg3: memref<1x256xf32, #tpu.memory_space<vmem>>, %arg4: memref<128x128xbf16, #tpu.memory_space<vmem>>, %arg5: memref<1x128xf32, #tpu.memory_space<vmem>>, %arg6: memref<128x128xbf16, #tpu.memory_space<vmem>>, %arg7: memref<1x128xf32, #tpu.memory_space<vmem>>, %arg8: memref<256x128xf32, #tpu.memory_space<vmem>>) attributes {dimension_semantics = [#tpu.dimension_semantics<parallel>], iteration_bounds = array<i64: 1>, scalar_prefetch = 0 : i64, scratch_operands = 0 : i64, tpu.core_type = #tpu.core_type<tc>, window_params = [{transform_indices = @transform_0, window_bounds = array<i64: 256, 32>}, {pipeline_mode = #tpu.pipeline_mode<synchronous>, transform_indices = @transform_1, window_bounds = array<i64: 32, 256>}, {pipeline_mode = #tpu.pipeline_mode<synchronous>, transform_indices = @transform_2, window_bounds = array<i64: 1, 256>}, {pipeline_mode = #tpu.pipeline_mode<synchronous>, transform_indices = @transform_3, window_bounds = array<i64: 128, 128>}, {pipeline_mode = #tpu.pipeline_mode<synchronous>, transform_indices = @transform_4, window_bounds = array<i64: 1, 128>}, {pipeline_mode = #tpu.pipeline_mode<synchronous>, transform_indices = @transform_5, window_bounds = array<i64: 128, 128>}, {pipeline_mode = #tpu.pipeline_mode<synchronous>, transform_indices = @transform_6, window_bounds = array<i64: 1, 128>}, {transform_indices = @transform_7, window_bounds = array<i64: 256, 128>}]} {
    %c0 = arith.constant 0 : index
    %c0_0 = arith.constant 0 : index
    %0 = vector.load %arg1[%c0, %c0_0] : memref<256x32xbf16, #tpu.memory_space<vmem>>, vector<256x32xbf16>
    %c0_1 = arith.constant 0 : index
    %c0_2 = arith.constant 0 : index
    %1 = vector.load %arg2[%c0_1, %c0_2] : memref<32x256xbf16, #tpu.memory_space<vmem>>, vector<32x256xbf16>
    %cst = arith.constant dense<0.000000e+00> : vector<256x256xf32>
    %2 = tpu.matmul %0, %1, %cst {dimension_numbers = #tpu.dot_dimension_numbers<[1], [0], [0], [1], [0, 0, 1, 1], [], []>} : vector<256x32xbf16>, vector<32x256xbf16>, vector<256x256xf32> -> vector<256x256xf32>
    %c0_3 = arith.constant 0 : index
    %c0_4 = arith.constant 0 : index
    %3 = vector.load %arg3[%c0_3, %c0_4] : memref<1x256xf32, #tpu.memory_space<vmem>>, vector<1x256xf32>
    %4 = vector.broadcast %3 : vector<1x256xf32> to vector<256x256xf32>
    %5 = arith.addf %2, %4 : vector<256x256xf32>
    %6 = vector.extract_strided_slice %5 {offsets = [0, 0], sizes = [256, 128], strides = [1, 1]} : vector<256x256xf32> to vector<256x128xf32>
    %7 = vector.extract_strided_slice %5 {offsets = [0, 128], sizes = [256, 128], strides = [1, 1]} : vector<256x256xf32> to vector<256x128xf32>
    %cst_5 = arith.constant 0.000000e+00 : f32
    %8 = vector.broadcast %cst_5 : f32 to vector<256x128xf32>
    %9 = arith.maximumf %6, %8 : vector<256x128xf32>
    %10 = arith.truncf %9 : vector<256x128xf32> to vector<256x128xbf16>
    %c0_6 = arith.constant 0 : index
    %c0_7 = arith.constant 0 : index
    %11 = vector.load %arg4[%c0_6, %c0_7] : memref<128x128xbf16, #tpu.memory_space<vmem>>, vector<128x128xbf16>
    %cst_8 = arith.constant dense<0.000000e+00> : vector<256x128xf32>
    %12 = tpu.matmul %10, %11, %cst_8 {dimension_numbers = #tpu.dot_dimension_numbers<[1], [0], [0], [1], [0, 0, 1, 1], [], []>} : vector<256x128xbf16>, vector<128x128xbf16>, vector<256x128xf32> -> vector<256x128xf32>
    %c0_9 = arith.constant 0 : index
    %c0_10 = arith.constant 0 : index
    %13 = vector.load %arg5[%c0_9, %c0_10] : memref<1x128xf32, #tpu.memory_space<vmem>>, vector<1x128xf32>
    %14 = vector.broadcast %13 : vector<1x128xf32> to vector<256x128xf32>
    %15 = arith.addf %12, %14 : vector<256x128xf32>
    %cst_11 = arith.constant 0.000000e+00 : f32
    %16 = vector.broadcast %cst_11 : f32 to vector<256x128xf32>
    %17 = arith.maximumf %15, %16 : vector<256x128xf32>
    %18 = arith.truncf %17 : vector<256x128xf32> to vector<256x128xbf16>
    %c0_12 = arith.constant 0 : index
    %c0_13 = arith.constant 0 : index
    %19 = vector.load %arg6[%c0_12, %c0_13] : memref<128x128xbf16, #tpu.memory_space<vmem>>, vector<128x128xbf16>
    %cst_14 = arith.constant dense<0.000000e+00> : vector<256x128xf32>
    %20 = tpu.matmul %18, %19, %cst_14 {dimension_numbers = #tpu.dot_dimension_numbers<[1], [0], [0], [1], [0, 0, 1, 1], [], []>} : vector<256x128xbf16>, vector<128x128xbf16>, vector<256x128xf32> -> vector<256x128xf32>
    %c0_15 = arith.constant 0 : index
    %c0_16 = arith.constant 0 : index
    %21 = vector.load %arg7[%c0_15, %c0_16] : memref<1x128xf32, #tpu.memory_space<vmem>>, vector<1x128xf32>
    %22 = vector.broadcast %21 : vector<1x128xf32> to vector<256x128xf32>
    %23 = arith.addf %20, %22 : vector<256x128xf32>
    %24 = arith.addf %23, %7 : vector<256x128xf32>
    %cst_17 = arith.constant 0.000000e+00 : f32
    %25 = vector.broadcast %cst_17 : f32 to vector<256x128xf32>
    %26 = arith.maximumf %24, %25 : vector<256x128xf32>
    %c0_18 = arith.constant 0 : index
    %c0_19 = arith.constant 0 : index
    %27 = vector.load %arg8[%c0_18, %c0_19] : memref<256x128xf32, #tpu.memory_space<vmem>>, vector<256x128xf32>
    tpu.vector_store %arg8[%c0_18, %c0_19], %26 {strides = array<i32>} : memref<256x128xf32, #tpu.memory_space<vmem>>, vector<256x128xf32>,
    return
  }
  func.func @transform_0(%arg0: i32) -> (i32, i32) {
    %c0_i32 = arith.constant 0 : i32
    %c0_i32_0 = arith.constant 0 : i32
    return %arg0, %c0_i32 : i32, i32
  }
  func.func @transform_1(%arg0: i32) -> (i32, i32) {
    %c0_i32 = arith.constant 0 : i32
    %c0_i32_0 = arith.constant 0 : i32
    %c0_i32_1 = arith.constant 0 : i32
    return %c0_i32, %c0_i32_0 : i32, i32
  }
  func.func @transform_2(%arg0: i32) -> (i32, i32) {
    %c0_i32 = arith.constant 0 : i32
    %c0_i32_0 = arith.constant 0 : i32
    %c0_i32_1 = arith.constant 0 : i32
    return %c0_i32, %c0_i32_0 : i32, i32
  }
  func.func @transform_3(%arg0: i32) -> (i32, i32) {
    %c0_i32 = arith.constant 0 : i32
    %c0_i32_0 = arith.constant 0 : i32
    %c0_i32_1 = arith.constant 0 : i32
    return %c0_i32, %c0_i32_0 : i32, i32
  }
  func.func @transform_4(%arg0: i32) -> (i32, i32) {
    %c0_i32 = arith.constant 0 : i32
    %c0_i32_0 = arith.constant 0 : i32
    %c0_i32_1 = arith.constant 0 : i32
    return %c0_i32, %c0_i32_0 : i32, i32
  }
  func.func @transform_5(%arg0: i32) -> (i32, i32) {
    %c0_i32 = arith.constant 0 : i32
    %c0_i32_0 = arith.constant 0 : i32
    %c0_i32_1 = arith.constant 0 : i32
    return %c0_i32, %c0_i32_0 : i32, i32
  }
  func.func @transform_6(%arg0: i32) -> (i32, i32) {
    %c0_i32 = arith.constant 0 : i32
    %c0_i32_0 = arith.constant 0 : i32
    %c0_i32_1 = arith.constant 0 : i32
    return %c0_i32, %c0_i32_0 : i32, i32
  }
  func.func @transform_7(%arg0: i32) -> (i32, i32) {
    %c0_i32 = arith.constant 0 : i32
    %c0_i32_0 = arith.constant 0 : i32
    return %arg0, %c0_i32 : i32, i32
  }
}

</mosaic_0001>

<bundles_post_ra>
// kernel: tpu_custom_call.1
= control target key start
LH: loop header
LB: loop body
LE: loop exit
PB: predicated region body
PF: predicated region fallthrough
CT: control target
= control target key end

     0   :  { %v1370_v2 = vmov 0   ;;  %vm176_vm0 = vcmask 261120   ;;  %s1815_s0 = inlined_call_operand.vmem [shape: bf16[256,32], index: 0, kind: input, shape index: {}]   ;;  %s1816_s1 = inlined_call_operand.vmem [shape: bf16[32,256], index: 1, kind: input, shape index: {}]   ;;  %s1817_s2 = inlined_call_operand.vmem [shape: f32[1,256], index: 2, kind: input, shape index: {}]   ;;  %s1818_s3 = inlined_call_operand.vmem [shape: bf16[128,128], index: 3, kind: input, shape index: {}]   ;;  %s1819_s4 = inlined_call_operand.vmem [shape: f32[1,128], index: 4, kind: input, shape index: {}]   ;;  %s1820_s5 = inlined_call_operand.vmem [shape: bf16[128,128], index: 5, kind: input, shape index: {}]   ;;  %s1821_s6 = inlined_call_operand.vmem [shape: f32[1,128], index: 6, kind: input, shape index: {}]   ;;  %s1822_s7 = inlined_call_operand.hbm [shape: f32[256,128], index: 7, kind: output, shape index: {}]  }
   0x1   :  { %v1308_v0 = vld [vmem:[%s1816_s1 + $0x4] ss:$8 sps:$4 sm:$0xff]   ;;  %v1310_v1 = vld [vmem:[%s1816_s1] ss:$8 sps:$4 sm:$0xff]   ;;  %257 = vmatprep.mubr.bf16.mxu0 %v1370_v2  ;;  %v1311_v3 = vld [vmem:[%s1816_s1 + $0x14] ss:$8 sps:$4 sm:$0xff]  }
   0x2   :  { %225 = vmatprep.subr.bf16.mxu0 %v1308_v0  ;;  %v1313_v4 = vld [vmem:[%s1816_s1 + $0x10] ss:$8 sps:$4 sm:$0xff]   ;;  %v1314_v5 = vld [vmem:[%s1815_s0] sm:$0xff]   ;;  %v1315_v6 = vld [vmem:[%s1815_s0 + $0x8] sm:$0xff]  }
   0x3   :  { %226 = vmatpush1.bf16.msra.mxu0 %v1310_v1  ;;  %v1330_v7 = vld [vmem:[%s1818_s3] sm:$0xff]   ;;  %v1331_v8 = vld [vmem:[%s1818_s3 + $0x8] sm:$0xff]   ;;  %v1316_v9 = vld [vmem:[%s1815_s0 + $0x10] sm:$0xff]  }
   0x4   :  { %227 = vmatprep.subr.bf16.mxu0 %v1311_v3  ;;  %1288 = vmatprep.subr.bf16.mxu1 %v1330_v7  ;;  %v1332_v10 = vld [vmem:[%s1818_s3 + $0x10] sm:$0xff]   ;;  %v1333_v11 = vld [vmem:[%s1818_s3 + $0x18] sm:$0xff]  }
   0x5   :  { %1296 = vmatpush3.bf16.msra.mxu1 %v1330_v7  ;;  %v1317_v12 = vld [vmem:[%s1815_s0 + $0x18] sm:$0xff]  }
   0x6   :  { %1289 = vmatprep.subr.bf16.mxu1 %v1331_v8 }
   0x7   :  { %228 = vmatpush1.bf16.msra.mxu0 %v1313_v4 }
   0x8   :  { %1192 = vmatprep.subr.bf16.mxu0 %v1330_v7 }
   0x9   :  { %1297 = vmatpush3.bf16.msra.mxu1 %v1331_v8 }
   0xa   :  { %1110 = vmatmul.mubr.msk.bf16.vlgmr.msra.gmra.mrb[0].mxu0 %vm176_vm0, %v1314_v5  ;;  %1290 = vmatprep.subr.bf16.mxu1 %v1332_v10 }
   0xb   :  { %267 = vmatprep.mubr.bf16.mxu0 %v1370_v2  ;;  %1193 = vmatpush3.bf16.msra.mxu0 %v1330_v7 }
   0xc   :  { %1194 = vmatprep.subr.bf16.mxu0 %v1331_v8 }
   0xd   :  { %1298 = vmatpush3.bf16.msra.mxu1 %v1332_v10 }
   0xe   :  { %1291 = vmatprep.subr.bf16.mxu1 %v1333_v11 }
   0xf   :  { %1195 = vmatpush3.bf16.msra.mxu0 %v1331_v8 }
  0x10   :  { %1196 = vmatprep.subr.bf16.mxu0 %v1332_v10 }
  0x12   :  { %1111 = vmatmul.mubr.msk.bf16.gmra.mrb[4].mxu0 %vm176_vm0, %v1315_v6 }
  0x13   :  { %277 = vmatprep.mubr.bf16.mxu0 %v1370_v2  ;;  %1197 = vmatpush3.bf16.msra.mxu0 %v1332_v10 }
  0x1a   :  { %1112 = vmatmul.mubr.msk.bf16.gmra.mrb[8].mxu0 %vm176_vm0, %v1316_v9 }
  0x1b   :  { %287 = vmatprep.mubr.bf16.mxu0 %v1370_v2 }
  0x1c   :  { %12 = vsyncpa [#allocation3], 0  ;;  %1198 = vmatprep.subr.bf16.mxu0 %v1333_v11  ;;  %1299 = vmatpush3.bf16.msra.mxu1 %v1333_v11  ;;  %v1318_v13 = vld [vmem:[%s1815_s0 + $0x20] sm:$0xff]   ;;  %v1319_v14 = vld [vmem:[%s1815_s0 + $0x28] sm:$0xff]   ;;  %v66_v29 = vlaneseq }
  0x1d   :  { %1199 = vmatpush3.bf16.msra.mxu0 %v1333_v11  ;;  %v1320_v15 = vld [vmem:[%s1815_s0 + $0x30] sm:$0xff]   ;;  %v1321_v16 = vld [vmem:[%s1815_s0 + $0x38] sm:$0xff]   ;;  %v1322_v17 = vld [vmem:[%s1815_s0 + $0x40] sm:$0xff]  }
  0x1e   :  { %v1323_v18 = vld [vmem:[%s1815_s0 + $0x48] sm:$0xff]   ;;  %v1324_v19 = vld [vmem:[%s1815_s0 + $0x50] sm:$0xff]   ;;  %v1334_v20 = vld [vmem:[%s1818_s3 + $0x20] sm:$0xff]   ;;  %v1530_v30 = vshrl.u32 %v66_v29, 7 }
  0x1f   :  { %v1325_v21 = vld [vmem:[%s1815_s0 + $0x58] sm:$0xff]   ;;  %1200 = vmatprep.subr.bf16.mxu0 %v1334_v20  ;;  %1292 = vmatprep.subr.bf16.mxu1 %v1334_v20  ;;  %v1335_v22 = vld [vmem:[%s1818_s3 + $0x28] sm:$0xff]   ;;  %v1336_v23 = vld [vmem:[%s1818_s3 + $0x30] sm:$0xff]  }
  0x20   :  { %1300 = vmatpush3.bf16.msra.mxu1 %v1334_v20  ;;  %v1326_v24 = vld [vmem:[%s1815_s0 + $0x60] sm:$0xff]   ;;  %v1337_v25 = vld [vmem:[%s1818_s3 + $0x38] sm:$0xff]   ;;  %v1327_v26 = vld [vmem:[%s1815_s0 + $0x68] sm:$0xff]   ;;  %v68_v31 = vsub.s32 0, %v1530_v30 }
  0x21   :  { %1201 = vmatpush3.bf16.msra.mxu0 %v1334_v20  ;;  %1293 = vmatprep.subr.bf16.mxu1 %v1335_v22  ;;  %v1328_v27 = vld [vmem:[%s1815_s0 + $0x70] sm:$0xff]   ;;  %v1329_v28 = vld [vmem:[%s1815_s0 + $0x78] sm:$0xff]   ;;  %v1536_v32 = vld [vmem:[%s1817_s2] sm:$0x3] }
  0x22   :  { %1113 = vmatmul.mubr.msk.bf16.gmra.mrb[12].mxu0 %vm176_vm0, %v1317_v12  ;;  %1202 = vmatprep.subr.bf16.mxu0 %v1335_v22  ;;  %v1539_v33 = vrot.slane %v1536_v32, %v68_v31  ;;  %v1338_v37 = vld [vmem:[%s1820_s5] sm:$0xff]   ;;  %v1339_v7 = vld [vmem:[%s1820_s5 + $0x8] sm:$0xff]  }
  0x23   :  { %297 = vmatprep.mubr.bf16.mxu0 %v1370_v2  ;;  %v1343_v29 = vld [vmem:[%s1820_s5 + $0x28] sm:$0xff]  }
  0x24   :  { %1301 = vmatpush3.bf16.msra.mxu1 %v1335_v22 }
  0x25   :  { %1203 = vmatpush3.bf16.msra.mxu0 %v1335_v22  ;;  %1294 = vmatprep.subr.bf16.mxu1 %v1336_v23 }
  0x26   :  { %1204 = vmatprep.subr.bf16.mxu0 %v1336_v23 }
  0x28   :  { %1302 = vmatpush3.bf16.msra.mxu1 %v1336_v23 }
  0x29   :  { %1205 = vmatpush3.bf16.msra.mxu0 %v1336_v23  ;;  %1295 = vmatprep.subr.bf16.mxu1 %v1337_v25 }
  0x2a   :  { %1114 = vmatmul.mubr.msk.bf16.gmra.mrb[16].mxu0 %vm176_vm0, %v1318_v13  ;;  %1206 = vmatprep.subr.bf16.mxu0 %v1337_v25 }
  0x2b   :  { %307 = vmatprep.mubr.bf16.mxu0 %v1370_v2 }
  0x2c   :  { %1303 = vmatpush3.bf16.msra.mxu1 %v1337_v25 }
  0x2d   :  { %1207 = vmatpush3.bf16.msra.mxu0 %v1337_v25  ;;  %1240 = vmatprep.subr.bf16.mxu1 %v1338_v37  ;;  %v1342_v25 = vld [vmem:[%s1820_s5 + $0x20] sm:$0xff]  }
  0x32   :  { %1115 = vmatmul.mubr.msk.bf16.gmra.mrb[20].mxu0 %vm176_vm0, %v1319_v14  ;;  %v1340_v14 = vld [vmem:[%s1820_s5 + $0x10] sm:$0xff]  }
  0x33   :  { %317 = vmatprep.mubr.bf16.mxu0 %v1370_v2 }
  0x3a   :  { %1116 = vmatmul.mubr.msk.bf16.gmra.mrb[24].mxu0 %vm176_vm0, %v1320_v15 }
  0x3b   :  { %327 = vmatprep.mubr.bf16.mxu0 %v1370_v2 }
  0x42   :  { %1117 = vmatmul.mubr.msk.bf16.gmra.mrb[28].mxu0 %vm176_vm0, %v1321_v16 }
  0x43   :  { %337 = vmatprep.mubr.bf16.mxu0 %v1370_v2 }
  0x4a   :  { %1118 = vmatmul.mubr.msk.bf16.gmra.mrb[32].mxu0 %vm176_vm0, %v1322_v17 }
  0x4b   :  { %347 = vmatprep.mubr.bf16.mxu0 %v1370_v2 }
  0x52   :  { %1119 = vmatmul.mubr.msk.bf16.gmra.mrb[36].mxu0 %vm176_vm0, %v1323_v18  ;;  %v1341_v18 = vld [vmem:[%s1820_s5 + $0x18] sm:$0xff]  }
  0x53   :  { %357 = vmatprep.mubr.bf16.mxu0 %v1370_v2 }
  0x5a   :  { %1120 = vmatmul.mubr.msk.bf16.gmra.mrb[40].mxu0 %vm176_vm0, %v1324_v19 }
  0x5b   :  { %367 = vmatprep.mubr.bf16.mxu0 %v1370_v2 }
  0x62   :  { %1121 = vmatmul.mubr.msk.bf16.gmra.mrb[44].mxu0 %vm176_vm0, %v1325_v21 }
  0x63   :  { %377 = vmatprep.mubr.bf16.mxu0 %v1370_v2 }
  0x6a   :  { %1122 = vmatmul.mubr.msk.bf16.gmra.mrb[48].mxu0 %vm176_vm0, %v1326_v24 }
  0x6b   :  { %387 = vmatprep.mubr.bf16.mxu0 %v1370_v2 }
  0x72   :  { %1123 = vmatmul.mubr.msk.bf16.gmra.mrb[52].mxu0 %vm176_vm0, %v1327_v26 }
  0x73   :  { %397 = vmatprep.mubr.bf16.mxu0 %v1370_v2 }
  0x7a   :  { %1124 = vmatmul.mubr.msk.bf16.gmra.mrb[56].mxu0 %vm176_vm0, %v1328_v27 }
  0x7b   :  { %407 = vmatprep.mubr.bf16.mxu0 %v1370_v2 }
  0x82   :  { %1125 = vmatmul.mubr.msk.bf16.gmra.mrb[60].mxu0 %vm176_vm0, %v1329_v28 }
  0xdd   :  { %v259_v34 = vpop.f32.mrb[0].mxu0 }
  0xde   :  { %v260_v35 = vadd.f32 %v259_v34, %v1539_v33  ;;  %v1542_v36 = vpop.f32.mrb[1].mxu0 }
  0xdf   :  { %v263_v38 = vpop.f32.mrb[2].mxu0 }
  0xe0   :  { %v264_v39 = vadd.f32 %v263_v38, %v1539_v33  ;;  %v1548_v40 = vpop.f32.mrb[3].mxu0  ;;  %v418_v41 = vmax.f32 %v260_v35, 0.0 }
  0xe2   :  { %v419_v42 = vmax.f32 %v264_v39, 0.0 }
  0xe4   :  { %v450_v43 = vpack.c.bf16 %v419_v42, %v418_v41 }
  0xe5   :  { %v269_v44 = vpop.f32.mrb[4].mxu0 }
  0xe6   :  { %v270_v45 = vadd.f32 %v269_v44, %v1539_v33  ;;  %v1551_v46 = vpop.f32.mrb[5].mxu0  ;;  %1208 = vmatprep.mubr.bf16.mxu0 %v450_v43 }
  0xe7   :  { %v273_v47 = vpop.f32.mrb[6].mxu0 }
  0xe8   :  { %v274_v48 = vadd.f32 %v273_v47, %v1539_v33  ;;  %v1554_v49 = vpop.f32.mrb[7].mxu0  ;;  %v420_v50 = vmax.f32 %v270_v45, 0.0 }
  0xea   :  { %v421_v51 = vmax.f32 %v274_v48, 0.0 }
  0xec   :  { %v451_v52 = vpack.c.bf16 %v421_v51, %v420_v50 }
  0xed   :  { %v279_v53 = vpop.f32.mrb[8].mxu0 }
  0xee   :  { %v280_v54 = vadd.f32 %v279_v53, %v1539_v33  ;;  %v1557_v55 = vpop.f32.mrb[9].mxu0  ;;  %1209 = vmatmul.mubr.bf16.vlgmr.msra.gmra.mrb[64].mxu0 %v451_v52 }
  0xef   :  { %v283_v56 = vpop.f32.mrb[10].mxu0 }
  0xf0   :  { %v284_v57 = vadd.f32 %v283_v56, %v1539_v33  ;;  %v1560_v58 = vpop.f32.mrb[11].mxu0  ;;  %v422_v59 = vmax.f32 %v280_v54, 0.0 }
  0xf2   :  { %v423_v60 = vmax.f32 %v284_v57, 0.0 }
  0xf4   :  { %v452_v61 = vpack.c.bf16 %v423_v60, %v422_v59 }
  0xf5   :  { %v289_v62 = vpop.f32.mrb[12].mxu0 }
  0xf6   :  { %v290_v63 = vadd.f32 %v289_v62, %v1539_v33  ;;  %v1563_v0 = vpop.f32.mrb[13].mxu0  ;;  %1212 = vmatprep.mubr.bf16.mxu1 %v452_v61 }
  0xf7   :  { %v293_v1 = vpop.f32.mrb[14].mxu0 }
  0xf8   :  { %v294_v2 = vadd.f32 %v293_v1, %v1539_v33  ;;  %v1566_v3 = vpop.f32.mrb[15].mxu0  ;;  %v424_v4 = vmax.f32 %v290_v63, 0.0 }
  0xfa   :  { %v425_v5 = vmax.f32 %v294_v2, 0.0 }
  0xfc   :  { %v453_v6 = vpack.c.bf16 %v425_v5, %v424_v4 }
  0xfd   :  { %v299_v8 = vpop.f32.mrb[16].mxu0 }
  0xfe   :  { %v300_v9 = vadd.f32 %v299_v8, %v1539_v33  ;;  %v1572_v10 = vpop.f32.mrb[17].mxu0  ;;  %1213 = vmatmul.mubr.bf16.vlgmr.msra.gmra.mrb[0].mxu1 %v453_v6 }
  0xff   :  { %v303_v11 = vpop.f32.mrb[18].mxu0  ;;  %1241 = vmatpush3.bf16.msra.mxu1 %v1338_v37 }
 0x100   :  { %v304_v12 = vadd.f32 %v303_v11, %v1539_v33  ;;  %v1575_v13 = vpop.f32.mrb[19].mxu0  ;;  %1242 = vmatprep.subr.bf16.mxu1 %v1339_v7  ;;  %v426_v15 = vmax.f32 %v300_v9, 0.0 }
 0x102   :  { %v427_v16 = vmax.f32 %v304_v12, 0.0 }
 0x103   :  { %1243 = vmatpush3.bf16.msra.mxu1 %v1339_v7 }
 0x104   :  { %v454_v17 = vpack.c.bf16 %v427_v16, %v426_v15  ;;  %1244 = vmatprep.subr.bf16.mxu1 %v1340_v14 }
 0x105   :  { %v309_v19 = vpop.f32.mrb[20].mxu0 }
 0x106   :  { %v310_v20 = vadd.f32 %v309_v19, %v1539_v33  ;;  %v1584_v21 = vpop.f32.mrb[21].mxu0  ;;  %1216 = vmatprep.mubr.bf16.mxu1 %v454_v17 }
 0x107   :  { %v313_v22 = vpop.f32.mrb[22].mxu0  ;;  %1245 = vmatpush3.bf16.msra.mxu1 %v1340_v14 }
 0x108   :  { %v314_v23 = vadd.f32 %v313_v22, %v1539_v33  ;;  %v1587_v24 = vpop.f32.mrb[23].mxu0  ;;  %1246 = vmatprep.subr.bf16.mxu1 %v1341_v18  ;;  %v428_v26 = vmax.f32 %v310_v20, 0.0 }
 0x10a   :  { %v429_v27 = vmax.f32 %v314_v23, 0.0 }
 0x10b   :  { %1247 = vmatpush3.bf16.msra.mxu1 %v1341_v18 }
 0x10c   :  { %v455_v28 = vpack.c.bf16 %v429_v27, %v428_v26  ;;  %1248 = vmatprep.subr.bf16.mxu1 %v1342_v25 }
 0x10d   :  { %v319_v31 = vpop.f32.mrb[24].mxu0 }
 0x10e   :  { %v320_v34 = vadd.f32 %v319_v31, %v1539_v33  ;;  %v1596_v35 = vpop.f32.mrb[25].mxu0  ;;  %1217 = vmatmul.mubr.bf16.gmra.mrb[4].mxu1 %v455_v28 }
 0x10f   :  { %v323_v37 = vpop.f32.mrb[26].mxu0  ;;  %1249 = vmatpush3.bf16.msra.mxu1 %v1342_v25 }
 0x110   :  { %v324_v38 = vadd.f32 %v323_v37, %v1539_v33  ;;  %v1599_v39 = vpop.f32.mrb[27].mxu0  ;;  %1250 = vmatprep.subr.bf16.mxu1 %v1343_v29  ;;  %v430_v41 = vmax.f32 %v320_v34, 0.0 }
 0x112   :  { %v431_v42 = vmax.f32 %v324_v38, 0.0 }
 0x113   :  { %1251 = vmatpush3.bf16.msra.mxu1 %v1343_v29 }
 0x114   :  { %v456_v43 = vpack.c.bf16 %v431_v42, %v430_v41 }
 0x115   :  { %v329_v44 = vpop.f32.mrb[28].mxu0 }
 0x116   :  { %v330_v45 = vadd.f32 %v329_v44, %v1539_v33  ;;  %v1602_v47 = vpop.f32.mrb[29].mxu0  ;;  %1220 = vmatprep.mubr.bf16.mxu1 %v456_v43 }
 0x117   :  { %v333_v48 = vpop.f32.mrb[30].mxu0 }
 0x118   :  { %v334_v50 = vadd.f32 %v333_v48, %v1539_v33  ;;  %v1605_v51 = vpop.f32.mrb[31].mxu0  ;;  %v432_v52 = vmax.f32 %v330_v45, 0.0 }
 0x11a   :  { %v433_v53 = vmax.f32 %v334_v50, 0.0 }
 0x11c   :  { %v457_v54 = vpack.c.bf16 %v433_v53, %v432_v52 }
 0x11d   :  { %v339_v56 = vpop.f32.mrb[32].mxu0 }
 0x11e   :  { %v340_v57 = vadd.f32 %v339_v56, %v1539_v33  ;;  %v1608_v59 = vpop.f32.mrb[33].mxu0  ;;  %1221 = vmatmul.mubr.bf16.gmra.mrb[8].mxu1 %v457_v54  ;;  %v1344_v54 = vld [vmem:[%s1820_s5 + $0x30] sm:$0xff]  }
 0x11f   :  { %v343_v60 = vpop.f32.mrb[34].mxu0  ;;  %1252 = vmatprep.subr.bf16.mxu1 %v1344_v54 }
 0x120   :  { %v344_v61 = vadd.f32 %v343_v60, %v1539_v33  ;;  %v1611_v62 = vpop.f32.mrb[35].mxu0  ;;  %v434_v63 = vmax.f32 %v340_v57, 0.0  ;;  %1253 = vmatpush3.bf16.msra.mxu1 %v1344_v54 }
 0x122   :  { %v435_v1 = vmax.f32 %v344_v61, 0.0 }
 0x124   :  { %v458_v2 = vpack.c.bf16 %v435_v1, %v434_v63  ;;  %v1345_v63 = vld [vmem:[%s1820_s5 + $0x38] sm:$0xff]  }
 0x125   :  { %v349_v4 = vpop.f32.mrb[36].mxu0  ;;  %1254 = vmatprep.subr.bf16.mxu1 %v1345_v63 }
 0x126   :  { %v350_v5 = vadd.f32 %v349_v4, %v1539_v33  ;;  %v1614_v6 = vpop.f32.mrb[37].mxu0  ;;  %1224 = vmatprep.mubr.bf16.mxu1 %v458_v2  ;;  %1255 = vmatpush3.bf16.msra.mxu1 %v1345_v63 }
 0x127   :  { %v353_v7 = vpop.f32.mrb[38].mxu0 }
 0x128   :  { %v354_v8 = vadd.f32 %v353_v7, %v1539_v33  ;;  %v1617_v9 = vpop.f32.mrb[39].mxu0  ;;  %v436_v11 = vmax.f32 %v350_v5, 0.0 }
 0x12a   :  { %v437_v12 = vmax.f32 %v354_v8, 0.0 }
 0x12c   :  { %v459_v14 = vpack.c.bf16 %v437_v12, %v436_v11 }
 0x12d   :  { %v359_v15 = vpop.f32.mrb[40].mxu0 }
 0x12e   :  { %v360_v16 = vadd.f32 %v359_v15, %v1539_v33  ;;  %v1620_v17 = vpop.f32.mrb[41].mxu0  ;;  %1225 = vmatmul.mubr.bf16.gmra.mrb[12].mxu1 %v459_v14 }
 0x12f   :  { %v363_v18 = vpop.f32.mrb[42].mxu0 }
 0x130   :  { %v364_v19 = vadd.f32 %v363_v18, %v1539_v33  ;;  %v1623_v20 = vpop.f32.mrb[43].mxu0  ;;  %v438_v22 = vmax.f32 %v360_v16, 0.0 }
 0x132   :  { %v439_v23 = vmax.f32 %v364_v19, 0.0 }
 0x134   :  { %v460_v25 = vpack.c.bf16 %v439_v23, %v438_v22 }
 0x135   :  { %v369_v26 = vpop.f32.mrb[44].mxu0 }
 0x136   :  { %v370_v27 = vadd.f32 %v369_v26, %v1539_v33  ;;  %v1626_v28 = vpop.f32.mrb[45].mxu0  ;;  %1228 = vmatprep.mubr.bf16.mxu1 %v460_v25 }
 0x137   :  { %v373_v29 = vpop.f32.mrb[46].mxu0 }
 0x138   :  { %v374_v31 = vadd.f32 %v373_v29, %v1539_v33  ;;  %v1629_v34 = vpop.f32.mrb[47].mxu0  ;;  %v440_v37 = vmax.f32 %v370_v27, 0.0 }
 0x13a   :  { %v441_v38 = vmax.f32 %v374_v31, 0.0 }
 0x13c   :  { %v461_v41 = vpack.c.bf16 %v441_v38, %v440_v37 }
 0x13d   :  { %v379_v42 = vpop.f32.mrb[48].mxu0 }
 0x13e   :  { %v380_v43 = vadd.f32 %v379_v42, %v1539_v33  ;;  %v1632_v44 = vpop.f32.mrb[49].mxu0  ;;  %1229 = vmatmul.mubr.bf16.gmra.mrb[16].mxu1 %v461_v41 }
 0x13f   :  { %v383_v45 = vpop.f32.mrb[50].mxu0 }
 0x140   :  { %v384_v48 = vadd.f32 %v383_v45, %v1539_v33  ;;  %v1635_v50 = vpop.f32.mrb[51].mxu0  ;;  %v442_v52 = vmax.f32 %v380_v43, 0.0  ;;  %v1664_v43 = vld [vmem:[%s1819_s4] ss:$0 sm:$0xff] }
 0x142   :  { %v443_v53 = vmax.f32 %v384_v48, 0.0 }
 0x144   :  { %v462_v56 = vpack.c.bf16 %v443_v53, %v442_v52 }
 0x145   :  { %v389_v57 = vpop.f32.mrb[52].mxu0 }
 0x146   :  { %v390_v60 = vadd.f32 %v389_v57, %v1539_v33  ;;  %v1641_v61 = vpop.f32.mrb[53].mxu0  ;;  %1232 = vmatprep.mubr.bf16.mxu1 %v462_v56 }
 0x147   :  { %v393_v1 = vpop.f32.mrb[54].mxu0 }
 0x148   :  { %v394_v2 = vadd.f32 %v393_v1, %v1539_v33  ;;  %v1647_v4 = vpop.f32.mrb[55].mxu0  ;;  %v444_v5 = vmax.f32 %v390_v60, 0.0 }
 0x14a   :  { %v445_v7 = vmax.f32 %v394_v2, 0.0 }
 0x14c   :  { %v463_v8 = vpack.c.bf16 %v445_v7, %v444_v5 }
 0x14d   :  { %v399_v11 = vpop.f32.mrb[56].mxu0 }
 0x14e   :  { %v400_v12 = vadd.f32 %v399_v11, %v1539_v33  ;;  %v1650_v14 = vpop.f32.mrb[57].mxu0  ;;  %1233 = vmatmul.mubr.bf16.gmra.mrb[20].mxu1 %v463_v8 }
 0x14f   :  { %v403_v15 = vpop.f32.mrb[58].mxu0 }
 0x150   :  { %v404_v16 = vadd.f32 %v403_v15, %v1539_v33  ;;  %v1653_v18 = vpop.f32.mrb[59].mxu0  ;;  %v446_v19 = vmax.f32 %v400_v12, 0.0 }
 0x152   :  { %v447_v22 = vmax.f32 %v404_v16, 0.0 }
 0x154   :  { %v464_v23 = vpack.c.bf16 %v447_v22, %v446_v19 }
 0x155   :  { %v409_v25 = vpop.f32.mrb[60].mxu0 }
 0x156   :  { %v410_v26 = vadd.f32 %v409_v25, %v1539_v33  ;;  %v1656_v27 = vpop.f32.mrb[61].mxu0  ;;  %1236 = vmatprep.mubr.bf16.mxu1 %v464_v23 }
 0x157   :  { %v413_v29 = vpop.f32.mrb[62].mxu0 }
 0x158   :  { %v414_v31 = vadd.f32 %v413_v29, %v1539_v33  ;;  %v1659_v37 = vpop.f32.mrb[63].mxu0  ;;  %v448_v38 = vmax.f32 %v410_v26, 0.0 }
 0x15a   :  { %v449_v41 = vmax.f32 %v414_v31, 0.0 }
 0x15c   :  { %v465_v42 = vpack.c.bf16 %v449_v41, %v448_v38 }
 0x15e   :  { %1237 = vmatmul.mubr.bf16.gmra.mrb[24].mxu1 %v465_v42 }
 0x1c1   :  { %v1210_v45 = vpop.f32.mrb[64].mxu0 }
 0x1c2   :  { %v580_v48 = vadd.f32 %v1210_v45, %v1664_v43  ;;  %v571_v52 = vpop.f32.mrb[65].mxu0 }
 0x1c3   :  { %v572_v53 = vadd.f32 %v1664_v43, %v571_v52  ;;  %v1211_v54 = vpop.f32.mrb[66].mxu0 }
 0x1c4   :  { %v583_v33 = vadd.f32 %v1211_v54, %v1664_v43  ;;  %v574_v56 = vpop.f32.mrb[67].mxu0  ;;  %v700_v60 = vmax.f32 %v580_v48, 0.0 }
 0x1c5   :  { %v575_v57 = vadd.f32 %v1664_v43, %v574_v56  ;;  %v698_v1 = vmax.f32 %v572_v53, 0.0 }
 0x1c6   :  { %v701_v63 = vmax.f32 %v583_v33, 0.0 }
 0x1c7   :  { %v699_v2 = vmax.f32 %v575_v57, 0.0 }
 0x1c8   :  { %v731_v5 = vpack.c.bf16 %v701_v63, %v700_v60 }
 0x1c9   :  { %v730_v7 = vpack.c.bf16 %v699_v2, %v698_v1 }
 0x1cb   :  { %1256 = vmatprep.mubr.bf16.mxu1 %v730_v7 }
 0x1cc   :  { %1257 = vmatmul.mubr.bf16.vlgmr.msra.gmra.mrb[28].mxu1 %v731_v5 }
 0x1d1   :  { %v1214_v8 = vpop.f32.mrb[0].mxu1 }
 0x1d2   :  { %v596_v11 = vadd.f32 %v1214_v8, %v1664_v43  ;;  %v587_v12 = vpop.f32.mrb[1].mxu1 }
 0x1d3   :  { %v588_v15 = vadd.f32 %v1664_v43, %v587_v12  ;;  %v1215_v16 = vpop.f32.mrb[2].mxu1 }
 0x1d4   :  { %v599_v19 = vadd.f32 %v1215_v16, %v1664_v43  ;;  %v590_v22 = vpop.f32.mrb[3].mxu1  ;;  %v704_v25 = vmax.f32 %v596_v11, 0.0 }
 0x1d5   :  { %v591_v23 = vadd.f32 %v1664_v43, %v590_v22  ;;  %v702_v29 = vmax.f32 %v588_v15, 0.0 }
 0x1d6   :  { %v705_v26 = vmax.f32 %v599_v19, 0.0 }
 0x1d7   :  { %v703_v31 = vmax.f32 %v591_v23, 0.0 }
 0x1d8   :  { %v733_v38 = vpack.c.bf16 %v705_v26, %v704_v25 }
 0x1d9   :  { %v732_v41 = vpack.c.bf16 %v703_v31, %v702_v29 }
 0x1db   :  { %1260 = vmatprep.mubr.bf16.mxu1 %v732_v41 }
 0x1dc   :  { %1261 = vmatmul.mubr.bf16.gmra.mrb[32].mxu1 %v733_v38 }
 0x1e1   :  { %v1218_v42 = vpop.f32.mrb[4].mxu1 }
 0x1e2   :  { %v612_v45 = vadd.f32 %v1218_v42, %v1664_v43  ;;  %v603_v48 = vpop.f32.mrb[5].mxu1 }
 0x1e3   :  { %v604_v52 = vadd.f32 %v1664_v43, %v603_v48  ;;  %v1219_v53 = vpop.f32.mrb[6].mxu1 }
 0x1e4   :  { %v615_v54 = vadd.f32 %v1219_v53, %v1664_v43  ;;  %v606_v33 = vpop.f32.mrb[7].mxu1  ;;  %v708_v57 = vmax.f32 %v612_v45, 0.0 }
 0x1e5   :  { %v607_v56 = vadd.f32 %v1664_v43, %v606_v33  ;;  %v706_v63 = vmax.f32 %v604_v52, 0.0 }
 0x1e6   :  { %v709_v60 = vmax.f32 %v615_v54, 0.0 }
 0x1e7   :  { %v707_v1 = vmax.f32 %v607_v56, 0.0 }
 0x1e8   :  { %v735_v2 = vpack.c.bf16 %v709_v60, %v708_v57 }
 0x1e9   :  { %v734_v5 = vpack.c.bf16 %v707_v1, %v706_v63 }
 0x1eb   :  { %1264 = vmatprep.mubr.bf16.mxu1 %v734_v5 }
 0x1ec   :  { %1265 = vmatmul.mubr.bf16.gmra.mrb[36].mxu1 %v735_v2 }
 0x1f1   :  { %v1222_v7 = vpop.f32.mrb[8].mxu1 }
 0x1f2   :  { %v628_v8 = vadd.f32 %v1222_v7, %v1664_v43  ;;  %v619_v11 = vpop.f32.mrb[9].mxu1 }
 0x1f3   :  { %v620_v12 = vadd.f32 %v1664_v43, %v619_v11  ;;  %v1223_v15 = vpop.f32.mrb[10].mxu1 }
 0x1f4   :  { %v631_v16 = vadd.f32 %v1223_v15, %v1664_v43  ;;  %v622_v19 = vpop.f32.mrb[11].mxu1  ;;  %v712_v23 = vmax.f32 %v628_v8, 0.0 }
 0x1f5   :  { %v623_v22 = vadd.f32 %v1664_v43, %v622_v19  ;;  %v710_v26 = vmax.f32 %v620_v12, 0.0 }
 0x1f6   :  { %v713_v25 = vmax.f32 %v631_v16, 0.0 }
 0x1f7   :  { %v711_v29 = vmax.f32 %v623_v22, 0.0 }
 0x1f8   :  { %v737_v31 = vpack.c.bf16 %v713_v25, %v712_v23 }
 0x1f9   :  { %v736_v38 = vpack.c.bf16 %v711_v29, %v710_v26 }
 0x1fb   :  { %1268 = vmatprep.mubr.bf16.mxu1 %v736_v38 }
 0x1fc   :  { %1269 = vmatmul.mubr.bf16.gmra.mrb[40].mxu1 %v737_v31 }
 0x201   :  { %v1226_v41 = vpop.f32.mrb[12].mxu1 }
 0x202   :  { %v644_v42 = vadd.f32 %v1226_v41, %v1664_v43  ;;  %v635_v45 = vpop.f32.mrb[13].mxu1 }
 0x203   :  { %v636_v48 = vadd.f32 %v1664_v43, %v635_v45  ;;  %v1227_v52 = vpop.f32.mrb[14].mxu1 }
 0x204   :  { %v647_v53 = vadd.f32 %v1227_v52, %v1664_v43  ;;  %v638_v54 = vpop.f32.mrb[15].mxu1  ;;  %v716_v56 = vmax.f32 %v644_v42, 0.0 }
 0x205   :  { %v639_v33 = vadd.f32 %v1664_v43, %v638_v54  ;;  %v714_v60 = vmax.f32 %v636_v48, 0.0 }
 0x206   :  { %v717_v57 = vmax.f32 %v647_v53, 0.0 }
 0x207   :  { %v715_v63 = vmax.f32 %v639_v33, 0.0 }
 0x208   :  { %v739_v1 = vpack.c.bf16 %v717_v57, %v716_v56 }
 0x209   :  { %v738_v2 = vpack.c.bf16 %v715_v63, %v714_v60 }
 0x20b   :  { %1272 = vmatprep.mubr.bf16.mxu1 %v738_v2 }
 0x20c   :  { %1273 = vmatmul.mubr.bf16.gmra.mrb[44].mxu1 %v739_v1 }
 0x211   :  { %v1230_v5 = vpop.f32.mrb[16].mxu1 }
 0x212   :  { %v660_v7 = vadd.f32 %v1230_v5, %v1664_v43  ;;  %v651_v8 = vpop.f32.mrb[17].mxu1 }
 0x213   :  { %v652_v11 = vadd.f32 %v1664_v43, %v651_v8  ;;  %v1231_v12 = vpop.f32.mrb[18].mxu1 }
 0x214   :  { %v663_v15 = vadd.f32 %v1231_v12, %v1664_v43  ;;  %v654_v16 = vpop.f32.mrb[19].mxu1  ;;  %v720_v22 = vmax.f32 %v660_v7, 0.0 }
 0x215   :  { %v655_v19 = vadd.f32 %v1664_v43, %v654_v16  ;;  %v718_v25 = vmax.f32 %v652_v11, 0.0 }
 0x216   :  { %v721_v23 = vmax.f32 %v663_v15, 0.0 }
 0x217   :  { %v719_v26 = vmax.f32 %v655_v19, 0.0 }
 0x218   :  { %v741_v29 = vpack.c.bf16 %v721_v23, %v720_v22 }
 0x219   :  { %v740_v31 = vpack.c.bf16 %v719_v26, %v718_v25 }
 0x21b   :  { %1276 = vmatprep.mubr.bf16.mxu1 %v740_v31  ;;  %v72_v31 = vsub.s32 1, %v1530_v30 }
 0x21c   :  { %1277 = vmatmul.mubr.bf16.gmra.mrb[48].mxu1 %v741_v29 }
 0x221   :  { %v1234_v38 = vpop.f32.mrb[20].mxu1 }
 0x222   :  { %v676_v41 = vadd.f32 %v1234_v38, %v1664_v43  ;;  %v667_v42 = vpop.f32.mrb[21].mxu1  ;;  %v1700_v38 = vrot.slane %v1536_v32, %v72_v31 }
 0x223   :  { %v668_v45 = vadd.f32 %v1664_v43, %v667_v42  ;;  %v1235_v48 = vpop.f32.mrb[22].mxu1 }
 0x224   :  { %v679_v52 = vadd.f32 %v1235_v48, %v1664_v43  ;;  %v670_v53 = vpop.f32.mrb[23].mxu1  ;;  %v724_v33 = vmax.f32 %v676_v41, 0.0  ;;  %v1705_v41 = vld [vmem:[%s1821_s6] ss:$0 sm:$0xff]  ;;  %v276_v32 = vadd.f32 %v1554_v49, %v1700_v38  ;;  %s1371_s6 = smov [#allocation2]  }
 0x225   :  { %v671_v54 = vadd.f32 %v1664_v43, %v670_v53  ;;  %v722_v57 = vmax.f32 %v668_v45, 0.0  ;;  %s1079_s25 = sshll.u32 %s1371_s6, 4  ;;  %s1080_s25 = int_to_ptr.vmem [resolvable:$true] %s1079_s25 }
 0x226   :  { %v725_v56 = vmax.f32 %v679_v52, 0.0  ;;  %v262_v52 = vadd.f32 %v1542_v36, %v1700_v38  ;;  %s1346_s26 = scalar_lea.vmem %s1080_s25, 4096  ;;  %p1351_p1 = scmp.lt.s32.totalorder %s1080_s25, %s1080_s25 }
 0x227   :  { %v723_v60 = vmax.f32 %v671_v54, 0.0  ;;  %p1347_p0 = scmp.ne.s32.totalorder %s1080_s25, %s1346_s26  ;;  %p1352_p2 = scmp.lt.s32.totalorder %s1346_s26, %s1346_s26 }
 0x228   :  { %v743_v63 = vpack.c.bf16 %v725_v56, %v724_v33 }
 0x229   :  { %v742_v1 = vpack.c.bf16 %v723_v60, %v722_v57  ;;  %v266_v57 = vadd.f32 %v1548_v40, %v1700_v38  ;;  %p1353_p3 = por %p1352_p2, %p1351_p1 }
 0x22b   :  { %1280 = vmatprep.mubr.bf16.mxu1 %v742_v1  ;;  %p1354_p4 = pnand %p1353_p3, %p1347_p0 }
 0x22c   :  { %1281 = vmatmul.mubr.bf16.gmra.mrb[52].mxu1 %v743_v63 }
 0x231   :  { %v1238_v2 = vpop.f32.mrb[24].mxu1 }
 0x232   :  { %v692_v5 = vadd.f32 %v1238_v2, %v1664_v43  ;;  %v683_v7 = vpop.f32.mrb[25].mxu1 }
 0x233   :  { %v684_v8 = vadd.f32 %v1664_v43, %v683_v7  ;;  %v1239_v11 = vpop.f32.mrb[26].mxu1 }
 0x234   :  { %v695_v12 = vadd.f32 %v1239_v11, %v1664_v43  ;;  %v686_v15 = vpop.f32.mrb[27].mxu1  ;;  %v728_v19 = vmax.f32 %v692_v5, 0.0 }
 0x235   :  { %v687_v16 = vadd.f32 %v1664_v43, %v686_v15  ;;  %v726_v23 = vmax.f32 %v684_v8, 0.0  ;;  %v272_v43 = vadd.f32 %v1551_v46, %v1700_v38  ;;  %v292_v8 = vadd.f32 %v1563_v0, %v1700_v38 }
 0x236   :  { %v729_v22 = vmax.f32 %v695_v12, 0.0  ;;  %v282_v12 = vadd.f32 %v1557_v55, %v1700_v38 }
 0x237   :  { %v727_v25 = vmax.f32 %v687_v16, 0.0 }
 0x238   :  { %v745_v26 = vpack.c.bf16 %v729_v22, %v728_v19  ;;  %v296_v19 = vadd.f32 %v1566_v3, %v1700_v38 }
 0x239   :  { %v744_v29 = vpack.c.bf16 %v727_v25, %v726_v23 }
 0x23b   :  { %1284 = vmatprep.mubr.bf16.mxu1 %v744_v29 }
 0x23c   :  { %1285 = vmatmul.mubr.bf16.gmra.mrb[56].mxu1 %v745_v26  ;;  %v286_v26 = vadd.f32 %v1560_v58, %v1700_v38 }
 0x29f   :  { %v1258_v42 = vpop.f32.mrb[28].mxu1 }
 0x2a0   :  { %v860_v45 = vadd.f32 %v1258_v42, %v1705_v41  ;;  %v851_v48 = vpop.f32.mrb[29].mxu1 }
 0x2a1   :  { %v852_v30 = vadd.f32 %v1705_v41, %v851_v48  ;;  %v1259_v53 = vpop.f32.mrb[30].mxu1 }
 0x2a2   :  { %v980_v54 = vadd.f32 %v860_v45, %v272_v43  ;;  %v863_v33 = vadd.f32 %v1259_v53, %v1705_v41  ;;  %v854_v56 = vpop.f32.mrb[31].mxu1  ;;  %v302_v53 = vadd.f32 %v1572_v10, %v1700_v38 }
 0x2a3   :  { %v978_v46 = vadd.f32 %v852_v30, %v262_v52  ;;  %v855_v60 = vadd.f32 %v1705_v41, %v854_v56  ;;  %v312_v52 = vadd.f32 %v1584_v21, %v1700_v38 }
 0x2a4   :  { %v1012_v63 = vmax.f32 %v980_v54, 0.0  ;;  %v981_v1 = vadd.f32 %v863_v33, %v276_v32  ;;  %v316_v33 = vadd.f32 %v1587_v24, %v1700_v38 }
 0x2a5   :  { %v1010_v2 = vmax.f32 %v978_v46, 0.0  ;;  %v979_v36 = vadd.f32 %v855_v60, %v266_v57  ;;  %v306_v60 = vadd.f32 %v1575_v13, %v1700_v38 }
 0x2a6   :  { %1044 = vst [vmem:[#allocation2 + $0x10] sm:$0xff] %v1012_v63  ;;  %v1013_v5 = vmax.f32 %v981_v1, 0.0 }
 0x2a7   :  { %1042 = vst [vmem:[#allocation2] sm:$0xff] %v1010_v2  ;;  %v1011_v7 = vmax.f32 %v979_v36, 0.0 }
 0x2a8   :  { %1045 = vst [vmem:[#allocation2 + $0x18] sm:$0xff] %v1013_v5 }
 0x2a9   :  { %1043 = vst [vmem:[#allocation2 + $0x8] sm:$0xff] %v1011_v7 }
 0x2af   :  { %v1262_v49 = vpop.f32.mrb[32].mxu1 }
 0x2b0   :  { %v876_v11 = vadd.f32 %v1262_v49, %v1705_v41  ;;  %v867_v40 = vpop.f32.mrb[33].mxu1  ;;  %v332_v49 = vadd.f32 %v1602_v47, %v1700_v38 }
 0x2b1   :  { %v868_v15 = vadd.f32 %v1705_v41, %v867_v40  ;;  %v1263_v16 = vpop.f32.mrb[34].mxu1 }
 0x2b2   :  { %v984_v22 = vadd.f32 %v876_v11, %v292_v8  ;;  %v879_v23 = vadd.f32 %v1263_v16, %v1705_v41  ;;  %v870_v25 = vpop.f32.mrb[35].mxu1  ;;  %v322_v11 = vadd.f32 %v1596_v35, %v1700_v38 }
 0x2b3   :  { %v982_v0 = vadd.f32 %v868_v15, %v282_v12  ;;  %v871_v29 = vadd.f32 %v1705_v41, %v870_v25  ;;  %v336_v15 = vadd.f32 %v1605_v51, %v1700_v38 }
 0x2b4   :  { %v1016_v31 = vmax.f32 %v984_v22, 0.0  ;;  %v985_v42 = vadd.f32 %v879_v23, %v296_v19  ;;  %v326_v23 = vadd.f32 %v1599_v39, %v1700_v38 }
 0x2b5   :  { %v1014_v43 = vmax.f32 %v982_v0, 0.0  ;;  %v983_v55 = vadd.f32 %v871_v29, %v286_v26 }
 0x2b6   :  { %1048 = vst [vmem:[#allocation2 + $0x30] sm:$0xff] %v1016_v31  ;;  %v1017_v45 = vmax.f32 %v985_v42, 0.0 }
 0x2b7   :  { %1046 = vst [vmem:[#allocation2 + $0x20] sm:$0xff] %v1014_v43  ;;  %v1015_v48 = vmax.f32 %v983_v55, 0.0  ;;  %v352_v43 = vadd.f32 %v1614_v6, %v1700_v38 }
 0x2b8   :  { %1049 = vst [vmem:[#allocation2 + $0x38] sm:$0xff] %v1017_v45  ;;  %v342_v45 = vadd.f32 %v1608_v59, %v1700_v38 }
 0x2b9   :  { %1047 = vst [vmem:[#allocation2 + $0x28] sm:$0xff] %v1015_v48 }
 0x2bf   :  { %v1266_v3 = vpop.f32.mrb[36].mxu1 }
 0x2c0   :  { %v892_v30 = vadd.f32 %v1266_v3, %v1705_v41  ;;  %v883_v58 = vpop.f32.mrb[37].mxu1 }
 0x2c1   :  { %v884_v32 = vadd.f32 %v1705_v41, %v883_v58  ;;  %v1267_v54 = vpop.f32.mrb[38].mxu1 }
 0x2c2   :  { %v988_v56 = vadd.f32 %v892_v30, %v312_v52  ;;  %v895_v57 = vadd.f32 %v1267_v54, %v1705_v41  ;;  %v886_v46 = vpop.f32.mrb[39].mxu1  ;;  %v356_v52 = vadd.f32 %v1617_v9, %v1700_v38 }
 0x2c3   :  { %v986_v21 = vadd.f32 %v884_v32, %v302_v53  ;;  %v887_v63 = vadd.f32 %v1705_v41, %v886_v46  ;;  %v346_v32 = vadd.f32 %v1611_v62, %v1700_v38 }
 0x2c4   :  { %v1020_v1 = vmax.f32 %v988_v56, 0.0  ;;  %v989_v2 = vadd.f32 %v895_v57, %v316_v33 }
 0x2c5   :  { %v1018_v36 = vmax.f32 %v986_v21, 0.0  ;;  %v987_v10 = vadd.f32 %v887_v63, %v306_v60  ;;  %v372_v21 = vadd.f32 %v1626_v28, %v1700_v38 }
 0x2c6   :  { %1052 = vst [vmem:[#allocation2 + $0x50] sm:$0xff] %v1020_v1  ;;  %v1021_v5 = vmax.f32 %v989_v2, 0.0  ;;  %v362_v1 = vadd.f32 %v1620_v17, %v1700_v38 }
 0x2c7   :  { %1050 = vst [vmem:[#allocation2 + $0x40] sm:$0xff] %v1018_v36  ;;  %v1019_v7 = vmax.f32 %v987_v10, 0.0  ;;  %v376_v10 = vadd.f32 %v1629_v34, %v1700_v38 }
 0x2c8   :  { %1053 = vst [vmem:[#allocation2 + $0x58] sm:$0xff] %v1021_v5 }
 0x2c9   :  { %1051 = vst [vmem:[#allocation2 + $0x48] sm:$0xff] %v1019_v7 }
 0x2cf   :  { %v1270_v24 = vpop.f32.mrb[40].mxu1 }
 0x2d0   :  { %v908_v8 = vadd.f32 %v1270_v24, %v1705_v41  ;;  %v899_v13 = vpop.f32.mrb[41].mxu1 }
 0x2d1   :  { %v900_v40 = vadd.f32 %v1705_v41, %v899_v13  ;;  %v1271_v12 = vpop.f32.mrb[42].mxu1 }
 0x2d2   :  { %v992_v16 = vadd.f32 %v908_v8, %v332_v49  ;;  %v911_v19 = vadd.f32 %v1271_v12, %v1705_v41  ;;  %v902_v22 = vpop.f32.mrb[43].mxu1  ;;  %v366_v49 = vadd.f32 %v1623_v20, %v1700_v38 }
 0x2d3   :  { %v990_v47 = vadd.f32 %v900_v40, %v322_v11  ;;  %v903_v25 = vadd.f32 %v1705_v41, %v902_v22  ;;  %v382_v22 = vadd.f32 %v1632_v44, %v1700_v38 }
 0x2d4   :  { %v1024_v26 = vmax.f32 %v992_v16, 0.0  ;;  %v993_v0 = vadd.f32 %v911_v19, %v336_v15  ;;  %v392_v16 = vadd.f32 %v1641_v61, %v1700_v38 }
 0x2d5   :  { %v1022_v29 = vmax.f32 %v990_v47, 0.0  ;;  %v991_v35 = vadd.f32 %v903_v25, %v326_v23  ;;  %v396_v25 = vadd.f32 %v1647_v4, %v1700_v38 }
 0x2d6   :  { %1056 = vst [vmem:[#allocation2 + $0x70] sm:$0xff] %v1024_v26  ;;  %v1025_v31 = vmax.f32 %v993_v0, 0.0 }
 0x2d7   :  { %1054 = vst [vmem:[#allocation2 + $0x60] sm:$0xff] %v1022_v29  ;;  %v1023_v42 = vmax.f32 %v991_v35, 0.0  ;;  %v386_v35 = vadd.f32 %v1635_v50, %v1700_v38 }
 0x2d8   :  { %1057 = vst [vmem:[#allocation2 + $0x78] sm:$0xff] %v1025_v31 }
 0x2d9   :  { %1055 = vst [vmem:[#allocation2 + $0x68] sm:$0xff] %v1023_v42 }
 0x2df   :  { %v1274_v51 = vpop.f32.mrb[44].mxu1 }
 0x2e0   :  { %v924_v55 = vadd.f32 %v1274_v51, %v1705_v41  ;;  %v915_v39 = vpop.f32.mrb[45].mxu1 }
 0x2e1   :  { %v916_v48 = vadd.f32 %v1705_v41, %v915_v39  ;;  %v1275_v3 = vpop.f32.mrb[46].mxu1 }
 0x2e2   :  { %v996_v30 = vadd.f32 %v924_v55, %v352_v43  ;;  %v927_v58 = vadd.f32 %v1275_v3, %v1705_v41  ;;  %v918_v53 = vpop.f32.mrb[47].mxu1  ;;  %v402_v3 = vadd.f32 %v1650_v14, %v1700_v38 }
 0x2e3   :  { %v994_v6 = vadd.f32 %v916_v48, %v342_v45  ;;  %v919_v54 = vadd.f32 %v1705_v41, %v918_v53  ;;  %v412_v45 = vadd.f32 %v1656_v27, %v1700_v38 }
 0x2e4   :  { %v1028_v33 = vmax.f32 %v996_v30, 0.0  ;;  %v997_v56 = vadd.f32 %v927_v58, %v356_v52  ;;  %v416_v58 = vadd.f32 %v1659_v37, %v1700_v38 }
 0x2e5   :  { %v1026_v57 = vmax.f32 %v994_v6, 0.0  ;;  %v995_v59 = vadd.f32 %v919_v54, %v346_v32  ;;  %v406_v54 = vadd.f32 %v1653_v18, %v1700_v38 }
 0x2e6   :  { %1060 = vst [vmem:[#allocation2 + $0x90] sm:$0xff] %v1028_v33  ;;  %v1029_v46 = vmax.f32 %v997_v56, 0.0 }
 0x2e7   :  { %1058 = vst [vmem:[#allocation2 + $0x80] sm:$0xff] %v1026_v57  ;;  %v1027_v60 = vmax.f32 %v995_v59, 0.0 }
 0x2e8   :  { %1061 = vst [vmem:[#allocation2 + $0x98] sm:$0xff] %v1029_v46 }
 0x2e9   :  { %1059 = vst [vmem:[#allocation2 + $0x88] sm:$0xff] %v1027_v60 }
 0x2ef   :  { %v1278_v9 = vpop.f32.mrb[48].mxu1 }
 0x2f0   :  { %v940_v63 = vadd.f32 %v1278_v9, %v1705_v41  ;;  %v931_v62 = vpop.f32.mrb[49].mxu1 }
 0x2f1   :  { %v932_v2 = vadd.f32 %v1705_v41, %v931_v62  ;;  %v1279_v36 = vpop.f32.mrb[50].mxu1 }
 0x2f2   :  { %v1000_v5 = vadd.f32 %v940_v63, %v372_v21  ;;  %v943_v7 = vadd.f32 %v1279_v36, %v1705_v41  ;;  %v934_v24 = vpop.f32.mrb[51].mxu1 }
 0x2f3   :  { %v998_v28 = vadd.f32 %v932_v2, %v362_v1  ;;  %v935_v8 = vadd.f32 %v1705_v41, %v934_v24 }
 0x2f4   :  { %v1032_v13 = vmax.f32 %v1000_v5, 0.0  ;;  %v1001_v11 = vadd.f32 %v943_v7, %v376_v10 }
 0x2f5   :  { %v1030_v40 = vmax.f32 %v998_v28, 0.0  ;;  %v999_v17 = vadd.f32 %v935_v8, %v366_v49 }
 0x2f6   :  { %1064 = vst [vmem:[#allocation2 + $0xb0] sm:$0xff] %v1032_v13  ;;  %v1033_v12 = vmax.f32 %v1001_v11, 0.0 }
 0x2f7   :  { %1062 = vst [vmem:[#allocation2 + $0xa0] sm:$0xff] %v1030_v40  ;;  %v1031_v15 = vmax.f32 %v999_v17, 0.0 }
 0x2f8   :  { %1065 = vst [vmem:[#allocation2 + $0xb8] sm:$0xff] %v1033_v12 }
 0x2f9   :  { %1063 = vst [vmem:[#allocation2 + $0xa8] sm:$0xff] %v1031_v15 }
 0x2ff   :  { %v1282_v34 = vpop.f32.mrb[52].mxu1 }
 0x300   :  { %v956_v19 = vadd.f32 %v1282_v34, %v1705_v41  ;;  %v947_v20 = vpop.f32.mrb[53].mxu1 }
 0x301   :  { %v948_v23 = vadd.f32 %v1705_v41, %v947_v20  ;;  %v1283_v47 = vpop.f32.mrb[54].mxu1 }
 0x302   :  { %v1004_v26 = vadd.f32 %v956_v19, %v392_v16  ;;  %v959_v0 = vadd.f32 %v1283_v47, %v1705_v41  ;;  %v950_v29 = vpop.f32.mrb[55].mxu1 }
 0x303   :  { %v1002_v61 = vadd.f32 %v948_v23, %v382_v22  ;;  %v951_v31 = vadd.f32 %v1705_v41, %v950_v29 }
 0x304   :  { %v1036_v42 = vmax.f32 %v1004_v26, 0.0  ;;  %v1005_v51 = vadd.f32 %v959_v0, %v396_v25 }
 0x305   :  { %v1034_v43 = vmax.f32 %v1002_v61, 0.0  ;;  %v1003_v44 = vadd.f32 %v951_v31, %v386_v35 }
 0x306   :  { %1068 = vst [vmem:[#allocation2 + $0xd0] sm:$0xff] %v1036_v42  ;;  %v1037_v55 = vmax.f32 %v1005_v51, 0.0 }
 0x307   :  { %1066 = vst [vmem:[#allocation2 + $0xc0] sm:$0xff] %v1034_v43  ;;  %v1035_v39 = vmax.f32 %v1003_v44, 0.0 }
 0x308   :  { %1069 = vst [vmem:[#allocation2 + $0xd8] sm:$0xff] %v1037_v55 }
 0x309   :  { %1067 = vst [vmem:[#allocation2 + $0xc8] sm:$0xff] %v1035_v39 }
 0x30f   :  { %v1286_v4 = vpop.f32.mrb[56].mxu1 }
 0x310   :  { %v972_v48 = vadd.f32 %v1286_v4, %v1705_v41  ;;  %v963_v50 = vpop.f32.mrb[57].mxu1 }
 0x311   :  { %v964_v52 = vadd.f32 %v1705_v41, %v963_v50  ;;  %v1287_v30 = vpop.f32.mrb[58].mxu1 }
 0x312   :  { %v1008_v53 = vadd.f32 %v972_v48, %v412_v45  ;;  %v975_v32 = vadd.f32 %v1287_v30, %v1705_v41  ;;  %v966_v6 = vpop.f32.mrb[59].mxu1 }
 0x313   :  { %v1006_v27 = vadd.f32 %v964_v52, %v402_v3  ;;  %v967_v33 = vadd.f32 %v1705_v41, %v966_v6 }
 0x314   :  { %v1040_v56 = vmax.f32 %v1008_v53, 0.0  ;;  %v1009_v14 = vadd.f32 %v975_v32, %v416_v58 }
 0x315   :  { %v1038_v57 = vmax.f32 %v1006_v27, 0.0  ;;  %v1007_v59 = vadd.f32 %v967_v33, %v406_v54 }
 0x316   :  { %1072 = vst [vmem:[#allocation2 + $0xf0] sm:$0xff] %v1040_v56  ;;  %v1041_v46 = vmax.f32 %v1009_v14, 0.0 }
 0x317   :  { %1070 = vst [vmem:[#allocation2 + $0xe0] sm:$0xff] %v1038_v57  ;;  %v1039_v37 = vmax.f32 %v1007_v59, 0.0 }
 0x318   :  { %1073 = vst [vmem:[#allocation2 + $0xf8] sm:$0xff] %v1041_v46 }
 0x319   :  { %1071 = vst [vmem:[#allocation2 + $0xe8] sm:$0xff] %v1039_v37 }
 0x31a   :  { %1357 = shalt.err (!%p1354_p4)
}
 0x31b   :  { %s1358_s29 = scalar_lea.hbm %s1822_s7, 4096 }
 0x31c   :  { %p1359_p5 = scmp.ne.s32.totalorder %s1822_s7, %s1358_s29  ;;  %p1362_p6 = scmp.lt.u32.totalorder %s1358_s29, %s1822_s7 }
 0x31e   :  { %p1364_p7 = pnand %p1362_p6, %p1359_p5 }
 0x320   :  { %1367 = shalt.err (!%p1364_p7)
}
 0x321   :  { %s1372_s0 = smov 128   ;;  %s1373_s10 = smov 8  }
 0x322   :  { %1085 = dma.vmem_to_hbm [thread:$0]  %s1080_s25, 4096, %s1822_s7, [#allocation3], %s1372_s0, %s1372_s0, %s1373_s10  }
 0x323   :  { %1368 = dma.done.wait [#allocation3], 4096  }
 0x324   :  { %1369 = vsyncadd [#allocation3], 4294963200 }
 0x325   :  { %1089 = vsyncpa [#allocation3], 1 }

</bundles_post_ra>
